<compile_context>
chip_gen: v6e
topology: v6e:2x2x1
jax: 0.10.0
libtpu: 0.0.40
codegen_flags: <defaults>
</compile_context>

<pallas_src>
import jax
import jax.numpy as jnp
from jax import lax
from jax.experimental import pallas as pl
from jax.experimental.pallas import tpu as pltpu


def _make_dice_kernel(n_total, c_total, smooth, s_valid, ts, needs_mask):
    def kernel(p_ref, t_ref, o_ref, inter_acc, sumsq_acc):
        s = pl.program_id(1)

        @pl.when(s == 0)
        def _():
            inter_acc[...] = jnp.zeros_like(inter_acc)
            sumsq_acc[...] = jnp.zeros_like(sumsq_acc)

        # (C, TS) tile of this batch element
        p = p_ref[0].astype(jnp.float32)
        t = t_ref[0].astype(jnp.float32)

        # softmax over the class axis (axis 0 here == dim=1 of NCHW)
        m = jnp.max(p, axis=0, keepdims=True)
        e = jnp.exp(p - m)
        denom = jnp.sum(e, axis=0, keepdims=True)
        # NOTE: pl.reciprocal(denom, approx=True) would move this divide to the
        # EUP slot; kept exact since the kernel is HBM-bound and we want
        # bit-tight agreement with the f32 reference.
        sm = e / denom

        if needs_mask:
            # zero out softmax of zero-padded columns of the last spatial tile
            col = s * ts + lax.broadcasted_iota(jnp.int32, (1, ts), 1)
            sm = jnp.where(col < s_valid, sm, 0.0)

        # BinaryDiceLoss partials per class (p=2):
        #   num = 2*sum(p*t)+smooth, den = sum(p^2 + t^2)+smooth
        inter_acc[...] += jnp.sum(sm * t, axis=1, keepdims=True)          # (C,1)
        # TODO(synk): for guaranteed hard one-hot targets t*t == t and this
        # multiply could be dropped; kept for exact parity with target.pow(2).
        sumsq_acc[...] += jnp.sum(sm * sm + t * t, axis=1, keepdims=True)  # (C,1)

        @pl.when(s == pl.num_programs(1) - 1)
        def _():
            num = 2.0 * inter_acc[...] + smooth
            den = sumsq_acc[...] + smooth
            per_class = 1.0 - num / den                                    # (C,1)
            # total_loss = sum_c mean_n(loss[n,c]) / C = sum_{n,c} loss / (N*C)
            contrib = jnp.sum(per_class) / (n_total * c_total)
            # lane-dense (unmasked) store of this batch element's partial
            o_ref[...] = jnp.full((1, 8, 128), contrib, dtype=jnp.float32)

    return kernel


def _choose_spatial_tile(S, C, pred_bytes, tgt_bytes,
                         vmem_budget_bytes=16 * 1024 * 1024):
    """Largest lane-dense spatial tile whose double-buffered input blocks stay
    within a conservative VMEM budget (safe on v7x's 64 MiB / 32 MiB scoped)."""
    per_lane = 2 * C * (pred_bytes + tgt_bytes)     # 2 pipeline buffers / input
    ts = max(128, (vmem_budget_bytes // per_lane) // 128 * 128)
    ts = min(ts, 32768)                             # keep several grid steps
    s_pad128 = pl.cdiv(S, 128) * 128
    return min(ts, s_pad128)


def multi_dice_loss(predict, target, smooth=1.0):
    """predict, target: [N, C, H, W]; target is one-hot over C."""
    N, C, H, W = predict.shape
    S = H * W
    p = predict.reshape(N, C, S)
    # one-hot target is exactly representable in bf16 -> halve its HBM bytes
    t = target.reshape(N, C, S).astype(jnp.bfloat16)

    ts = _choose_spatial_tile(S, C, p.dtype.itemsize, t.dtype.itemsize)
    n_s = pl.cdiv(S, ts)
    s_pad = n_s * ts
    if s_pad != S:
        p = jnp.pad(p, ((0, 0), (0, 0), (0, s_pad - S)))
        t = jnp.pad(t, ((0, 0), (0, 0), (0, s_pad - S)))

    kernel = _make_dice_kernel(N, C, float(smooth), S, ts, s_pad != S)

    out = pl.pallas_call(
        kernel,
        out_shape=jax.ShapeDtypeStruct((N, 8, 128), jnp.float32),
        grid_spec=pltpu.PrefetchScalarGridSpec(
            num_scalar_prefetch=0,
            grid=(N, n_s),
            in_specs=[
                pl.BlockSpec((1, C, ts), lambda n, s: (n, 0, s)),
                pl.BlockSpec((1, C, ts), lambda n, s: (n, 0, s)),
            ],
            out_specs=pl.BlockSpec((1, 8, 128), lambda n, s: (n, 0, 0)),
            scratch_shapes=[
                pltpu.VMEM((C, 1), jnp.float32),   # per-class intersection
                pltpu.VMEM((C, 1), jnp.float32),   # per-class sum of squares
            ],
        ),
        compiler_params=pltpu.CompilerParams(
            dimension_semantics=("parallel", "arbitrary"),
        ),
    )(p, t)
    # every lane of out[n] holds that batch element's partial, already /(N*C)
    return jnp.sum(out[:, 0, 0])


def multi_dice_loss_ref(predict, target, smooth=1.0):
    """Pure-JAX reference mirroring the PyTorch forward."""
    N, C = predict.shape[:2]
    sm = jax.nn.softmax(predict, axis=1)
    p = sm.reshape(N, C, -1)
    t = target.reshape(N, C, -1)
    total = 0.0
    for i in range(C):
        num = 2.0 * jnp.sum(p[:, i] * t[:, i], axis=1) + smooth
        den = jnp.sum(p[:, i] ** 2 + t[:, i] ** 2, axis=1) + smooth
        total = total + jnp.mean(1.0 - num / den)
    return total / C


if __name__ == "__main__":
    key = jax.random.PRNGKey(0)
    k1, k2 = jax.random.split(key)

    N, C, H, W = 2, 4, 16, 16
    predict = jax.random.normal(k1, (N, C, H, W), dtype=jnp.float32)

    # one-hot target over classes, same shape as predict
    labels = jax.random.randint(k2, (N, H, W), 0, C)
    target = jax.nn.one_hot(labels, C, axis=1, dtype=jnp.float32)  # [N, C, H, W]

    loss = multi_dice_loss(predict, target)
    loss = jax.block_until_ready(loss)

    ref = multi_dice_loss_ref(predict, target)
    assert jnp.allclose(loss, ref, atol=1e-5, rtol=1e-5), (loss, ref)

    print("KERNEL_OK")
</pallas_src>

<mosaic_0001>
module attributes {stable_mosaic.version = 11 : i64} {
  func.func @kernel(%arg0: i32, %arg1: i32, %arg2: memref<1x4x256xf32, #tpu.memory_space<vmem>>, %arg3: memref<1x4x256xbf16, #tpu.memory_space<vmem>>, %arg4: memref<1x8x128xf32, #tpu.memory_space<vmem>>, %arg5: memref<4x1xf32, #tpu.memory_space<vmem>>, %arg6: memref<4x1xf32, #tpu.memory_space<vmem>>) attributes {dimension_semantics = [#tpu.dimension_semantics<parallel>, #tpu.dimension_semantics<arbitrary>], iteration_bounds = array<i64: 2, 1>, scalar_prefetch = 0 : i64, scratch_operands = 2 : i64, tpu.core_type = #tpu.core_type<tc>, window_params = [{transform_indices = @transform_0, window_bounds = array<i64: 1, 4, 256>}, {transform_indices = @transform_1, window_bounds = array<i64: 1, 4, 256>}, {transform_indices = @transform_2, window_bounds = array<i64: 1, 8, 128>}]} {
    %c0_i32 = arith.constant 0 : i32
    %0 = arith.cmpi eq, %arg1, %c0_i32 : i32
    %1 = arith.extui %0 : i1 to i32
    %c0_i32_0 = arith.constant 0 : i32
    %2 = arith.cmpi ne, %1, %c0_i32_0 : i32
    scf.if %2 {
      %cst_19 = arith.constant 0.000000e+00 : f32
      %34 = vector.broadcast %cst_19 : f32 to vector<4x1xf32>
      %c0_20 = arith.constant 0 : index
      %c0_21 = arith.constant 0 : index
      %35 = vector.load %arg5[%c0_20, %c0_21] : memref<4x1xf32, #tpu.memory_space<vmem>>, vector<4x1xf32>
      tpu.vector_store %arg5[%c0_20, %c0_21], %34 {strides = array<i32>} : memref<4x1xf32, #tpu.memory_space<vmem>>, vector<4x1xf32>,
      %cst_22 = arith.constant 0.000000e+00 : f32
      %36 = vector.broadcast %cst_22 : f32 to vector<4x1xf32>
      %c0_23 = arith.constant 0 : index
      %c0_24 = arith.constant 0 : index
      %37 = vector.load %arg6[%c0_23, %c0_24] : memref<4x1xf32, #tpu.memory_space<vmem>>, vector<4x1xf32>
      tpu.vector_store %arg6[%c0_23, %c0_24], %36 {strides = array<i32>} : memref<4x1xf32, #tpu.memory_space<vmem>>, vector<4x1xf32>,
    } else {
    }
    %c0 = arith.constant 0 : index
    %c0_1 = arith.constant 0 : index
    %c0_2 = arith.constant 0 : index
    %3 = vector.load %arg2[%c0, %c0_1, %c0_2] : memref<1x4x256xf32, #tpu.memory_space<vmem>>, vector<1x4x256xf32>
    %4 = vector.shape_cast %3 : vector<1x4x256xf32> to vector<4x256xf32>
    %c0_3 = arith.constant 0 : index
    %c0_4 = arith.constant 0 : index
    %c0_5 = arith.constant 0 : index
    %5 = vector.load %arg3[%c0_3, %c0_4, %c0_5] : memref<1x4x256xbf16, #tpu.memory_space<vmem>>, vector<1x4x256xbf16>
    %6 = vector.shape_cast %5 : vector<1x4x256xbf16> to vector<4x256xbf16>
    %7 = arith.extf %6 : vector<4x256xbf16> to vector<4x256xf32>
    %cst = arith.constant dense<0xFF800000> : vector<256xf32>
    %8 = vector.multi_reduction <maximumf>, %4, %cst [0] : vector<4x256xf32> to vector<256xf32>
    %9 = vector.shape_cast %8 : vector<256xf32> to vector<1x256xf32>
    %10 = vector.broadcast %9 : vector<1x256xf32> to vector<4x256xf32>
    %11 = arith.subf %4, %10 : vector<4x256xf32>
    %12 = math.exp %11 : vector<4x256xf32>
    %cst_6 = arith.constant dense<0.000000e+00> : vector<256xf32>
    %13 = vector.multi_reduction <add>, %12, %cst_6 [0] : vector<4x256xf32> to vector<256xf32>
    %14 = vector.shape_cast %13 : vector<256xf32> to vector<1x256xf32>
    %15 = vector.broadcast %14 : vector<1x256xf32> to vector<4x256xf32>
    %16 = arith.divf %12, %15 : vector<4x256xf32>
    %c0_7 = arith.constant 0 : index
    %c0_8 = arith.constant 0 : index
    %17 = vector.load %arg5[%c0_7, %c0_8] : memref<4x1xf32, #tpu.memory_space<vmem>>, vector<4x1xf32>
    %18 = arith.mulf %16, %7 : vector<4x256xf32>
    %cst_9 = arith.constant dense<0.000000e+00> : vector<4xf32>
    %19 = vector.multi_reduction <add>, %18, %cst_9 [1] : vector<4x256xf32> to vector<4xf32>
    %20 = vector.shape_cast %19 : vector<4xf32> to vector<4x1xf32>
    %21 = arith.addf %17, %20 : vector<4x1xf32>
    %c0_10 = arith.constant 0 : index
    %c0_11 = arith.constant 0 : index
    %22 = vector.load %arg5[%c0_10, %c0_11] : memref<4x1xf32, #tpu.memory_space<vmem>>, vector<4x1xf32>
    tpu.vector_store %arg5[%c0_10, %c0_11], %21 {strides = array<i32>} : memref<4x1xf32, #tpu.memory_space<vmem>>, vector<4x1xf32>,
    %c0_12 = arith.constant 0 : index
    %c0_13 = arith.constant 0 : index
    %23 = vector.load %arg6[%c0_12, %c0_13] : memref<4x1xf32, #tpu.memory_space<vmem>>, vector<4x1xf32>
    %24 = arith.mulf %16, %16 : vector<4x256xf32>
    %25 = arith.mulf %7, %7 : vector<4x256xf32>
    %26 = arith.addf %24, %25 : vector<4x256xf32>
    %cst_14 = arith.constant dense<0.000000e+00> : vector<4xf32>
    %27 = vector.multi_reduction <add>, %26, %cst_14 [1] : vector<4x256xf32> to vector<4xf32>
    %28 = vector.shape_cast %27 : vector<4xf32> to vector<4x1xf32>
    %29 = arith.addf %23, %28 : vector<4x1xf32>
    %c0_15 = arith.constant 0 : index
    %c0_16 = arith.constant 0 : index
    %30 = vector.load %arg6[%c0_15, %c0_16] : memref<4x1xf32, #tpu.memory_space<vmem>>, vector<4x1xf32>
    tpu.vector_store %arg6[%c0_15, %c0_16], %29 {strides = array<i32>} : memref<4x1xf32, #tpu.memory_space<vmem>>, vector<4x1xf32>,
    %c0_i32_17 = arith.constant 0 : i32
    %31 = arith.cmpi eq, %arg1, %c0_i32_17 : i32
    %32 = arith.extui %31 : i1 to i32
    %c0_i32_18 = arith.constant 0 : i32
    %33 = arith.cmpi ne, %32, %c0_i32_18 : i32
    scf.if %33 {
      %c0_19 = arith.constant 0 : index
      %c0_20 = arith.constant 0 : index
      %34 = vector.load %arg5[%c0_19, %c0_20] : memref<4x1xf32, #tpu.memory_space<vmem>>, vector<4x1xf32>
      %cst_21 = arith.constant 2.000000e+00 : f32
      %35 = vector.broadcast %cst_21 : f32 to vector<4x1xf32>
      %36 = arith.mulf %35, %34 : vector<4x1xf32>
      %cst_22 = arith.constant 1.000000e+00 : f32
      %37 = vector.broadcast %cst_22 : f32 to vector<4x1xf32>
      %38 = arith.addf %36, %37 : vector<4x1xf32>
      %c0_23 = arith.constant 0 : index
      %c0_24 = arith.constant 0 : index
      %39 = vector.load %arg6[%c0_23, %c0_24] : memref<4x1xf32, #tpu.memory_space<vmem>>, vector<4x1xf32>
      %cst_25 = arith.constant 1.000000e+00 : f32
      %40 = vector.broadcast %cst_25 : f32 to vector<4x1xf32>
      %41 = arith.addf %39, %40 : vector<4x1xf32>
      %42 = arith.divf %38, %41 : vector<4x1xf32>
      %cst_26 = arith.constant 1.000000e+00 : f32
      %43 = vector.broadcast %cst_26 : f32 to vector<4x1xf32>
      %44 = arith.subf %43, %42 : vector<4x1xf32>
      %45 = vector.shape_cast %44 : vector<4x1xf32> to vector<1x4x1xf32>
      %cst_27 = arith.constant dense<0.000000e+00> : vector<1xf32>
      %46 = vector.multi_reduction <add>, %45, %cst_27 [1, 2] : vector<1x4x1xf32> to vector<1xf32>
      %47 = vector.shape_cast %46 : vector<1xf32> to vector<1x1x1xf32>
      %48 = vector.extract %47[0, 0, 0] : f32 from vector<1x1x1xf32>
      %cst_28 = arith.constant 8.000000e+00 : f32
      %49 = arith.divf %48, %cst_28 : f32
      %50 = vector.broadcast %49 : f32 to vector<1x8x128xf32>
      %c0_29 = arith.constant 0 : index
      %c0_30 = arith.constant 0 : index
      %c0_31 = arith.constant 0 : index
      %51 = vector.load %arg4[%c0_29, %c0_30, %c0_31] : memref<1x8x128xf32, #tpu.memory_space<vmem>>, vector<1x8x128xf32>
      tpu.vector_store %arg4[%c0_29, %c0_30, %c0_31], %50 {strides = array<i32>} : memref<1x8x128xf32, #tpu.memory_space<vmem>>, vector<1x8x128xf32>,
    } else {
    }
    return
  }
  func.func @transform_0(%arg0: i32, %arg1: i32) -> (i32, i32, i32) {
    %c0_i32 = arith.constant 0 : i32
    %c0_i32_0 = arith.constant 0 : i32
    return %arg0, %c0_i32, %arg1 : i32, i32, i32
  }
  func.func @transform_1(%arg0: i32, %arg1: i32) -> (i32, i32, i32) {
    %c0_i32 = arith.constant 0 : i32
    %c0_i32_0 = arith.constant 0 : i32
    return %arg0, %c0_i32, %arg1 : i32, i32, i32
  }
  func.func @transform_2(%arg0: i32, %arg1: i32) -> (i32, i32, i32) {
    %c0_i32 = arith.constant 0 : i32
    %c0_i32_0 = arith.constant 0 : i32
    %c0_i32_1 = arith.constant 0 : i32
    return %arg0, %c0_i32, %c0_i32_0 : i32, i32, i32
  }
}

</mosaic_0001>

<bundles_post_ra>
// kernel: tpu_custom_call.1
= control target key start
LH: loop header
LB: loop body
LE: loop exit
PB: predicated region body
PF: predicated region fallthrough
CT: control target
= control target key end

     0   :  { %7 = vsyncpa [#allocation5], 0  ;;  %s900_s0 = inlined_call_operand.hbm [shape: f32[2,4,256], index: 0, kind: input, shape index: {}]   ;;  %s901_s1 = inlined_call_operand.hbm [shape: bf16[2,4,256], index: 1, kind: input, shape index: {}]   ;;  %s902_s2 = inlined_call_operand.hbm [shape: f32[2,8,128], index: 2, kind: output, shape index: {}]  }
   0x1   :  { %9 = vsyncpa [#allocation5 + $0x1], 0 }
   0x2   :  { %10 = vsyncpa [#allocation8], 0 }
   0x3   :  { %12 = vsyncpa [#allocation8 + $0x1], 0 }
   0x4   :  { %13 = vsyncpa [#allocation6], 0 }
   0x5   :  { %15 = vsyncpa [#allocation6 + $0x1], 0  ;;  %s710_s9 = smov 0   ;;  %s712_s10 = smov 0  }
   0x6   :  { %s714_s11 = smov 0   ;;  %s716_s12 = smov 0  }
   0x7   :  { %s718_s13 = smov 0   ;;  %s720_s14 = smov 0  }
   0x8 LB: > { %s452_s15 = sadd.s32 4294967295, %s689_s14   ;;  %s453_s16 = sadd.s32 4294967294, %s689_s14   ;;  %s689_s14 = sphi %s720_s14, %s21_s14   ;;  %s685_s13 = sphi %s718_s13, %s914_s13   ;;  %s681_s12 = sphi %s716_s12, %s913_s12   ;;  %s677_s11 = sphi %s714_s11, %s912_s11   ;;  %s673_s10 = sphi %s712_s10, %s911_s10   ;;  %s669_s9 = sphi %s710_s9, %s910_s9  }
   0x9   : > { %s33_s17 = sadd.s32 1, %s685_s13  ;;  %s42_s18 = sadd.s32 1, %s677_s11 }
   0xa   : > { %p35_p0 = scmp.ge.s32.totalorder %s33_s17, 2  ;;  %p49_p1 = scmp.ne.s32.totalorder %s677_s11, %s673_s10 }
   0xb   : > { %p50_p2 = scmp.eq.s32.totalorder %s689_s14, 0  ;;  %p55_p3 = scmp.ne.s32.totalorder %s673_s10, %s669_s9 }
   0xc   : > { %s916_s17 = smov (%p35_p0, %s33_s17), 0  ;;  %p56_p5 = scmp.eq.s32.totalorder %s452_s15, 0 }
   0xd   : > { %p751_p4 = por %p50_p2, %p49_p1  ;;  %s37_s20 = ssub.s32 %s685_s13, %s916_s17 }
   0xe   : > { %p107_p6 = scmp.eq.s32.totalorder %s452_s15, 1  ;;  %p40_p7 = scmp.eq.s32.totalorder %s37_s20, 0 }
   0xf   : > { %p757_p8 = por %p56_p5, %p55_p3  ;;  %p113_p10 = scmp.eq.s32.totalorder %s453_s16, 1 }
  0x10   : > { %p761_p9 = por %p107_p6, %p49_p1  ;;  %p491_p13 = scmp.lt.s32.totalorder %s689_s14, 2 }
  0x11   : > { %s766_s23 = scalar_select %p40_p7, %s677_s11, %s42_s18  }
  0x12   : > { %p768_p11 = por %p113_p10, %p55_p3  ;;  %s775_s25 = sand.u32 1, %s677_s11  }
  0x13   : > { %s456_s26 = sshll.u32 %s775_s25, 3  ;;  %s470_s27 = sshll.u32 %s685_s13, 7 }
  0x14   : > { %s145_s30 = scalar_lea.hbm %s900_s0, %s470_s27  ;;  %s137_s3 = scalar_lea.vmem [#allocation4], %s456_s26 }
  0x15   : > { %s147_s4 = sshll.u32 %s137_s3, 4  ;;  %p784_p0 = pnand %p491_p13, %p751_p4  ;;  %s148_s4 = int_to_ptr.vmem [resolvable:$true] %s147_s4 }
  0x16   : > { %p462_p1 = scmp.ge.s32.totalorder %s689_s14, 1  ;;  %p173_p2 = scmp.lt.s32.totalorder %s689_s14, 3 }
  0x17   : > { %s134_s6 = scalar_lea.sflag [#allocation5], %s775_s25  ;;  %p551_p3 = pneg %p784_p0 }
  0x18   : > { %s562_s7 = scalar_lea.vmem %s148_s4, 128  ;;  %s691_s8 = smov [#allocation4]  }
  0x19   : > { %p563_p5 = scmp.ne.s32.totalorder %s148_s4, %s562_s7  ;;  %s567_s15 = sshll.u32 %s691_s8, 4  ;;  %s568_s15 = int_to_ptr.vmem [resolvable:$false] %s567_s15 }
  0x1a   : > { %s569_s16 = scalar_lea.vmem %s568_s15, 256  ;;  %p570_p4 = scmp.lt.s32.totalorder %s148_s4, %s568_s15 }
  0x1b   : > { %p565_p6 = pnand %p563_p5, %p551_p3  ;;  %p571_p10 = scmp.lt.s32.totalorder %s569_s16, %s562_s7 }
  0x1d   : > { %p566_p7 = pneg %p565_p6  ;;  %p572_p13 = por %p571_p10, %p570_p4 }
  0x1f   : > { %p573_p12 = pnand %p572_p13, %p566_p7 }
  0x21   : > { %576 = shalt.err (!%p573_p12)
}
  0x22   : > { %483 = dma.hbm_to_vmem [thread:$0]  (!%p784_p0), %s145_s30, 128, %s148_s4, %s134_s6  }
  0x23   : > { %p802_p5 = pnand %p462_p1, %p173_p2  ;;  %s459_s19 = sshll.u32 %s775_s25, 2 }
  0x24   : > { %s471_s20 = sshll.u32 %s685_s13, 6  ;;  %s158_s29 = scalar_lea.vmem [#allocation7], %s459_s19 }
  0x25   : > { %s166_s28 = scalar_lea.hbm %s901_s1, %s471_s20  ;;  %s168_s3 = sshll.u32 %s158_s29, 4  ;;  %s169_s3 = int_to_ptr.vmem [resolvable:$true] %s168_s3 }
  0x26   : > { %s155_s7 = scalar_lea.sflag [#allocation8], %s775_s25  ;;  %s590_s8 = scalar_lea.vmem %s169_s3, 64 }
  0x27   : > { %p591_p12 = scmp.ne.s32.totalorder %s169_s3, %s590_s8  ;;  %s692_s30 = smov [#allocation7]  }
  0x28   : > { %s595_s4 = sshll.u32 %s692_s30, 4  ;;  %s596_s4 = int_to_ptr.vmem [resolvable:$false] %s595_s4 }
  0x29   : > { %p593_p6 = pnand %p591_p12, %p551_p3  ;;  %s597_s6 = scalar_lea.vmem %s596_s4, 128 }
  0x2a   : > { %p598_p1 = scmp.lt.s32.totalorder %s169_s3, %s596_s4  ;;  %p599_p2 = scmp.lt.s32.totalorder %s597_s6, %s590_s8 }
  0x2b   : > { %p594_p7 = pneg %p593_p6 }
  0x2c   : > { %p600_p4 = por %p599_p2, %p598_p1 }
  0x2e   : > { %p601_p10 = pnand %p600_p4, %p594_p7 }
  0x30   : > { %604 = shalt.err (!%p601_p10)
}
  0x31   : > { %486 = dma.hbm_to_vmem [thread:$0]  (!%p784_p0), %s166_s28, 64, %s169_s3, %s155_s7  }
  0x32   : > { %177 = sbr.rel (%p802_p5) target bundleno = 522 (0x20a), region = 28  ;;  %s820_s25 = sand.u32 (!%p802_p5), 1, %s673_s10  }
  0x33   : > { %s463_s15 = sshll.u32 (!%p802_p5), %s820_s25, 3  ;;  %s180_s16 = scalar_lea.sflag (!%p802_p5), [#allocation5], %s820_s25 }
  0x34   : > { %s183_s19 = scalar_lea.vmem (!%p802_p5), [#allocation4], %s463_s15 }
  0x37   : > { %656 = dma.done.wait (%p757_p8), %s180_s16, 128  }
  0x38   : > { %658 = vsyncadd (%p757_p8), %s180_s16, 4294967168  ;;  %s464_s5 = sshll.u32 %s820_s25, 2  ;;  %s189_s18 = scalar_lea.sflag [#allocation8], %s820_s25 }
  0x39   : > { %s832_s20 = scalar_lea.vmem [#allocation7], %s464_s5 }
  0x3a   : > { %660 = dma.done.wait (%p757_p8), %s189_s18, 64  }
  0x3b   : > { %662 = vsyncadd (%p757_p8), %s189_s18, 4294967232  ;;  %vm224_vm0 = vcmask 3072   ;;  %v693_v0 = vmov 0.0   ;;  %vm233_vm1 = vcmask 1043456   ;;  %v227_v1 = vld [vmem:[%s183_s19] sm:$0xff]  ;;  %s217_s21 = scalar_lea.vmem [#allocation9], %s463_s15 }
  0x3c   : > { %226 = vst.msk [vmem:[#allocation3] sm:$0xf] %vm224_vm0, %v693_v0  ;;  %225 = vst.msk [vmem:[#allocation2] sm:$0xf] %vm224_vm0, %v693_v0  ;;  %v231_v2 = vcombine.high %v227_v1, %v227_v1  ;;  %v234_v3 = vsel %vm233_vm1, %v227_v1, -inf  ;;  %s345_s26 = sshll.u32 %s217_s21, 4  ;;  %s346_s26 = int_to_ptr.vmem [resolvable:$true] %s345_s26 }
  0x3d   : > { %v235_v4 = vrot.slane %v234_v3, 4  ;;  %v228_v37 = vld [vmem:[%s832_s20] sm:$0xf]  ;;  %s467_s27 = sshll.u32 %s681_s12, 7  ;;  %s332_s30 = scalar_lea.sflag [#allocation6], %s820_s25 }
  0x3e   : > { %v241_v5 = vsel %vm233_vm1, %v231_v2, -inf  ;;  %v229_v38 = vunpack.c.l.bf16 %v228_v37  ;;  %s858_s8 = scalar_lea.hbm %s902_s2, %s467_s27  ;;  %s605_s4 = scalar_lea.vmem %s346_s26, 128 }
  0x3f   : > { %v236_v6 = vmax.f32 %v234_v3, %v235_v4  ;;  %v242_v7 = vrot.slane %v241_v5, 4  ;;  %p606_p8 = scmp.ne.s32.totalorder %s346_s26, %s605_s4  ;;  %s694_s6 = smov [#allocation9]  }
  0x40   : > { %v293_v41 = vmul.f32 %v229_v38, %v229_v38  ;;  %s609_s15 = sshll.u32 %s694_s6, 4  ;;  %s610_s15 = int_to_ptr.vmem [resolvable:$false] %s609_s15 }
  0x41   : > { %v237_v8 = vrot.slane %v236_v6, 2  ;;  %v243_v9 = vmax.f32 %v241_v5, %v242_v7  ;;  %p607_p0 = pnand %p606_p8, %p761_p9  ;;  %s611_s12 = scalar_lea.vmem %s610_s15, 256 }
  0x42   : > { %p612_p13 = scmp.lt.s32.totalorder %s346_s26, %s610_s15  ;;  %p613_p5 = scmp.lt.s32.totalorder %s611_s12, %s605_s4 }
  0x43   : > { %v238_v10 = vmax.f32 %v236_v6, %v237_v8  ;;  %v244_v11 = vrot.slane %v243_v9, 2  ;;  %v291_v53 = vld [vmem:[#allocation3] sm:$0xf]  ;;  %v278_v56 = vld [vmem:[#allocation2] sm:$0xf]  ;;  %p608_p3 = pneg %p607_p0 }
  0x44   : > { %p614_p12 = por %p613_p5, %p612_p13 }
  0x45   : > { %v239_v12 = vrot.slane %v238_v10, 1  ;;  %v245_v13 = vmax.f32 %v243_v9, %v244_v11 }
  0x46   : > { %p615_p6 = pnand %p614_p12, %p608_p3 }
  0x47   : > { %v240_v14 = vmax.f32 %v238_v10, %v239_v12  ;;  %v246_v15 = vrot.slane %v245_v13, 1 }
  0x49   : > { %v247_v16 = vmax.f32 %v245_v13, %v246_v15 }
  0x4b   : > { %v250_v17 = vcombine.low %v240_v14, %v247_v16 }
  0x4d   : > { %v252_v18 = vsub.f32 %v227_v1, %v250_v17 }
  0x4f   : > { %v253_v19 = vmul.f32 1.442695, %v252_v18 }
  0x51   : > { %543 = vpow2.f32 %v253_v19 }
  0x5e   : > { %v544_v20 = vpop.eup %543 }
  0x5f   : > { %v256_v21 = vcombine.high %v544_v20, %v544_v20  ;;  %v258_v22 = vsel %vm233_vm1, %v544_v20, 0.0 }
  0x60   : > { %v259_v23 = vrot.slane %v258_v22, 4 }
  0x61   : > { %v265_v24 = vsel %vm233_vm1, %v256_v21, 0.0 }
  0x62   : > { %v260_v25 = vadd.f32 %v259_v23, %v258_v22  ;;  %v266_v26 = vrot.slane %v265_v24, 4 }
  0x64   : > { %v261_v27 = vrot.slane %v260_v25, 2  ;;  %v267_v28 = vadd.f32 %v266_v26, %v265_v24 }
  0x66   : > { %v262_v29 = vadd.f32 %v261_v27, %v260_v25  ;;  %v268_v30 = vrot.slane %v267_v28, 2 }
  0x68   : > { %v263_v31 = vrot.slane %v262_v29, 1  ;;  %v269_v32 = vadd.f32 %v268_v30, %v267_v28 }
  0x6a   : > { %v264_v33 = vadd.f32 %v263_v31, %v262_v29  ;;  %v270_v34 = vrot.slane %v269_v32, 1 }
  0x6c   : > { %v271_v35 = vadd.f32 %v270_v34, %v269_v32 }
  0x6e   : > { %v274_v36 = vcombine.low %v264_v33, %v271_v35 }
  0x70   : > { %545 = vrcp.f32 %v274_v36 }
  0x7d   : > { %v546_v39 = vpop.eup %545 }
  0x7e   : > { %v277_v40 = vmul.f32 %v546_v39, %v544_v20 }
  0x80   : > { %v292_v42 = vmul.f32 %v277_v40, %v277_v40  ;;  %v279_v43 = vmul.f32 %v277_v40, %v229_v38 }
  0x82   : > { %v294_v44 = vadd.f32 %v293_v41, %v292_v42  ;;  %v281_v45 = vcombine.high %v279_v43, %v279_v43  ;;  %v283_v49 = vsel %vm233_vm1, %v279_v43, 0.0 }
  0x84   : > { %v296_v46 = vcombine.high %v294_v44, %v294_v44  ;;  %v298_v47 = vsel %vm233_vm1, %v294_v44, 0.0  ;;  %v284_v50 = vsel %vm233_vm1, %v281_v45, 0.0 }
  0x85   : > { %v285_v52 = vadd.f32 %v284_v50, %v283_v49 }
  0x86   : > { %v299_v48 = vsel %vm233_vm1, %v296_v46, 0.0 }
  0x87   : > { %v300_v51 = vadd.f32 %v299_v48, %v298_v47 }
  0x89   : > { %301 = vadd.xlane.f32.xlu0 %v300_v51 }
  0x8d   : > { %286 = vadd.xlane.f32.xlu0 %v285_v52 }
 0x112   : > { %v302_v54 = vpop.xlane.xlu0 %301 }
 0x113   : > { %v303_v55 = vadd.f32 %v302_v54, %v291_v53 }
 0x115   : > { %304 = vst.msk [vmem:[#allocation3] sm:$0xf] %vm224_vm0, %v303_v55 }
 0x116   : > { %v287_v57 = vpop.xlane.xlu0 %286 }
 0x117   : > { %v288_v58 = vadd.f32 %v287_v57, %v278_v56 }
 0x119   : > { %290 = vst.msk [vmem:[#allocation2] sm:$0xf] %vm224_vm0, %v288_v58 }
 0x11c   : > { %v311_v59 = vld [vmem:[#allocation3] sm:$0xf] }
 0x11d   : > { %v312_v60 = vadd.f32 1.0, %v311_v59 }
 0x11f   : > { %547 = vrcp.f32 %v312_v60 }
 0x120   : > { %v308_v61 = vld [vmem:[#allocation2] sm:$0xf] }
 0x121   : > { %v309_v62 = vmul.f32 2.0, %v308_v61 }
 0x123   : > { %v310_v63 = vadd.f32 1.0, %v309_v62 }
 0x12c   : > { %v548_v0 = vpop.eup %547 }
 0x12d   : > { %v314_v1 = vmul.f32 %v548_v0, %v310_v63 }
 0x12f   : > { %v315_v2 = vsub.f32 1.0, %v314_v1 }
 0x131   : > { %v316_v3 = vsel %vm224_vm0, %v315_v2, 0.0 }
 0x132   : > { %317 = vadd.xlane.f32.xlu1 %v316_v3 }
 0x1bb   : > { %v318_v4 = vpop.xlane.xlu1 %317 }
 0x1bc   : > { %v319_v5 = vrot.slane %v318_v4, 4 }
 0x1be   : > { %v320_v6 = vadd.f32 %v319_v5, %v318_v4 }
 0x1c0   : > { %v321_v7 = vrot.slane %v320_v6, 2 }
 0x1c2   : > { %v322_v8 = vadd.f32 %v321_v7, %v320_v6 }
 0x1c4   : > { %v323_v9 = vrot.slane %v322_v8, 1 }
 0x1c6   : > { %v324_v10 = vadd.f32 %v323_v9, %v322_v8 }
 0x1c8   : > { %472 = vpush %v324_v10 }
 0x1f9   : > { %s473_s28 = spop %472 }
 0x1fa   : > { %s328_s29 = smul.f32 0.125, %s473_s28 }
 0x1fc   : > { %v329_v11 = vstv %s328_s29 }
 0x1fd   : > { %330 = vst [vmem:[%s217_s21] sm:$0xff] %v329_v11 }
 0x1fe   : > { %618 = shalt.err (!%p615_p6)
}
 0x1ff   : > { %s619_s16 = scalar_lea.hbm %s858_s8, 128  ;;  %s623_s5 = scalar_lea.hbm %s902_s2, 256 }
 0x200   : > { %p620_p7 = scmp.ne.s32.totalorder %s858_s8, %s619_s16  ;;  %p624_p4 = scmp.lt.s32.totalorder %s858_s8, %s902_s2 }
 0x201   : > { %p625_p10 = scmp.lt.s32.totalorder %s623_s5, %s619_s16 }
 0x202   : > { %p621_p1 = pnand %p620_p7, %p761_p9 }
 0x203   : > { %p626_p8 = por %p625_p10, %p624_p4 }
 0x204   : > { %p622_p2 = pneg %p621_p1 }
 0x206   : > { %p627_p0 = pnand %p626_p8, %p622_p2 }
 0x208   : > { %630 = shalt.err (!%p627_p0)
}
 0x209   : > { %478 = dma.vmem_to_hbm [thread:$0]  (%p761_p9), %s346_s26, 128, %s858_s8, %s332_s30  }
 0x20a PF: > { %s357_s21 = sand.u32 1, %s669_s9   ;;  %p909_p3 = scmp.ge.s32.totalorder %s689_s14, 2 }
 0x20b   : > { %s358_s27 = scalar_lea.sflag [#allocation6], %s357_s21 }
 0x20c   : > { %p488_p13 = pnand %p909_p3, %p768_p11 }
 0x20e   : > { %p489_p5 = pneg %p488_p13 }
 0x210   : > { %664 = dma.done.wait (%p489_p5), %s358_s27, 128  }
 0x211   : > { %666 = vsyncadd (%p489_p5), %s358_s27, 4294967168  ;;  %s21_s14 = sadd.s32 1, %s689_s14   ;;  %s910_s9 = smov %s673_s10 }
 0x212   : > { %p18_p12 = scmp.ge.s32.totalorder %s21_s14, 4   ;;  %s911_s10 = smov %s677_s11 }
 0x213   : > { %s912_s11 = smov %s766_s23  ;;  %s913_s12 = smov %s685_s13 }
 0x214   : > { %s914_s13 = smov %s916_s17  ;;  %20 = sbr.rel (!%p18_p12) target bundleno = 8 (0x8), region = 94 }
 0x219   :  { %363 = vsyncpa [#allocation5], 1 }
 0x21a   :  { %365 = vsyncpa [#allocation5 + $0x1], 1 }
 0x21b   :  { %366 = vsyncpa [#allocation8], 1 }
 0x21c   :  { %368 = vsyncpa [#allocation8 + $0x1], 1 }
 0x21d   :  { %369 = vsyncpa [#allocation6], 1 }
 0x21e   :  { %371 = vsyncpa [#allocation6 + $0x1], 1 }

</bundles_post_ra>
